<compile_context>
chip_gen: v7x
topology: tpu7x:2x2x1
jax: 0.10.0
libtpu: 0.0.40
codegen_flags: <defaults>
</compile_context>

<pallas_src>
import math
import functools

import jax
import jax.numpy as jnp
from jax import lax
from jax.experimental import pallas as pl
from jax.experimental.pallas import tpu as pltpu

_EPSILON = 1e-6


# ----------------------------- Pallas kernel ------------------------------ #
def _fast_attn_kernel(q_ref, k_ref, v_ref, orf_t_ref, o_ref, *,
                      h, proj_scale, norm_scale, feat_scale):
    # q_ref / k_ref / v_ref / o_ref : (1, L, d_model = h * d_k)
    # orf_t_ref                     : (d_k, m)   (pre-transposed on host)
    d_k, m = orf_t_ref.shape
    q = q_ref[0].astype(jnp.float32)            # (L, d_model)
    k = k_ref[0].astype(jnp.float32)
    v = v_ref[0].astype(jnp.float32)
    orf_t = orf_t_ref[...].astype(jnp.float32)  # (d_k, m)
    L = q.shape[0]

    ones_col = jnp.ones((L, 1), jnp.float32)

    # dot_general dimension_numbers -> no in-kernel transposes (XLU stays free).
    dn_proj = (((1,), (0,)), ((), ()))  # (L,d_k) x (d_k,m)   -> (L,m)
    dn_kv = (((0,), (0,)), ((), ()))    # (L,m)   x (L,d_k+1) -> (m,d_k+1)
    dn_out = (((1,), (0,)), ((), ()))   # (L,m)   x (m,d_k+1) -> (L,d_k+1)

    def feature_map(x_h):
        proj = lax.dot_general(x_h, orf_t, dn_proj,
                               preferred_element_type=jnp.float32) * proj_scale
        norm = jnp.sum(x_h * x_h, axis=-1, keepdims=True) * norm_scale
        # NOTE: no max-subtraction, matching the reference module exactly.
        return (jnp.exp(proj - norm) + _EPSILON) * feat_scale

    head_outs = []
    for hh in range(h):                          # static unroll over heads
        lo = hh * d_k
        q_h = q[:, lo:lo + d_k]                  # (L, d_k)
        k_h = k[:, lo:lo + d_k]
        v_h = v[:, lo:lo + d_k]

        qp = feature_map(q_h)                    # (L, m)
        kp = feature_map(k_h)                    # (L, m)

        # Fused numerator + denominator: augment V with a ones column so the
        # denominator rides the same MXU pass as the kv matmul.
        v_aug = jnp.concatenate([v_h, ones_col], axis=-1)              # (L, d_k+1)
        kv_aug = lax.dot_general(kp, v_aug, dn_kv,
                                 preferred_element_type=jnp.float32)   # (m, d_k+1)
        out_aug = lax.dot_general(qp, kv_aug, dn_out,
                                  preferred_element_type=jnp.float32)  # (L, d_k+1)
        num = out_aug[:, :d_k]                                         # (L, d_k)
        den = out_aug[:, d_k:d_k + 1]                                  # (L, 1)
        head_outs.append(num * pl.reciprocal(den, approx=True))

    # Single lane-dense store across the full d_model axis.
    o_ref[0] = jnp.concatenate(head_outs, axis=-1).astype(o_ref.dtype)


def fast_attention_pallas(q, k, v, orf, *, h):
    """q, k, v: (B, L, d_model = h*d_k);  orf: (m, d_k)  ->  (B, L, d_model)."""
    B, L, d_model = q.shape
    m, d_k = orf.shape
    assert d_model == h * d_k

    # Scales exactly as the PyTorch apply_kernel computes them.  (That code
    # unpacks orf.shape as (d_k, m) although create_orf returns an (m, d_k)
    # buffer; we reproduce the literal behavior of the original module.)
    spec_dk, spec_m = orf.shape
    proj_scale = 1.0 / math.pow(spec_dk, 0.25)
    norm_scale = 1.0 / (2.0 * math.sqrt(spec_dk))
    feat_scale = 1.0 / math.sqrt(spec_m)

    orf_t = orf.T  # (d_k, m): transpose hoisted out of the kernel, done once.

    qkv_spec = pl.BlockSpec((1, L, d_model), lambda b: (b, 0, 0))
    orf_spec = pl.BlockSpec((d_k, m), lambda b: (0, 0))

    kernel = functools.partial(
        _fast_attn_kernel, h=h,
        proj_scale=proj_scale, norm_scale=norm_scale, feat_scale=feat_scale)

    return pl.pallas_call(
        kernel,
        out_shape=jax.ShapeDtypeStruct((B, L, d_model), q.dtype),
        grid_spec=pltpu.PrefetchScalarGridSpec(
            num_scalar_prefetch=0,
            grid=(B,),
            in_specs=[qkv_spec, qkv_spec, qkv_spec, orf_spec],
            out_specs=qkv_spec,
        ),
        compiler_params=pltpu.CompilerParams(
            dimension_semantics=("parallel",),
            vmem_limit_bytes=32 * 1024 * 1024,
        ),
    )(q, k, v, orf_t)


# ------------------------------- JAX glue --------------------------------- #
def create_orf(key, d_k, m):
    """Deterministic JAX port of create_orf (orthogonal random features)."""
    k1, k2 = jax.random.split(key)
    n_blocks = math.ceil(m / d_k)
    blocks = jax.random.normal(k1, (n_blocks, d_k, d_k), dtype=jnp.float32)
    q, _ = jnp.linalg.qr(blocks)                                 # (n_blocks, d_k, d_k)
    scale = jnp.linalg.norm(
        jax.random.normal(k2, (m, d_k), dtype=jnp.float32), axis=1
    )                                                            # (m,)
    return scale[:, None] * q.reshape(-1, d_k)[:m]               # (m, d_k)


def _linear(x, w, b):
    # PyTorch nn.Linear: y = x @ W.T + b
    return x @ w.T + b


def fast_self_attention_forward(x, weights, biases, orf, *, h):
    # QKV projections stay in (B, L, d_model); the per-head split/concat of the
    # PyTorch module is handled inside the kernel via lane slicing, so there
    # are no wrapper-side transposes.
    q = _linear(x, weights[0], biases[0])
    k = _linear(x, weights[1], biases[1])
    v = _linear(x, weights[2], biases[2])
    out = fast_attention_pallas(q, k, v, orf, h=h)   # Pallas hot path
    return _linear(out, weights[3], biases[3])


# --------------------------- pure-JAX reference ---------------------------- #
def _ref_apply_kernel(x, orf, epsilon=_EPSILON):
    # Literal transliteration of the PyTorch apply_kernel (including its
    # unpacking of orf.shape as (d_k, m)).
    d_k, m = orf.shape
    proj_x = x @ orf.T / math.pow(d_k, 0.25)
    norm = jnp.sum(x ** 2, axis=-1, keepdims=True) / (2.0 * math.sqrt(d_k))
    return (jnp.exp(proj_x - norm) + epsilon) / math.sqrt(m)


def _reference_forward(x, weights, biases, orf, *, h):
    B, L, d_model = x.shape
    d_k = d_model // h

    def split_by_head(t):
        return t.reshape(B, L, h, d_k).transpose(0, 2, 1, 3).reshape(B * h, L, d_k)

    q = _ref_apply_kernel(split_by_head(_linear(x, weights[0], biases[0])), orf)
    k = _ref_apply_kernel(split_by_head(_linear(x, weights[1], biases[1])), orf)
    v = split_by_head(_linear(x, weights[2], biases[2]))

    buf = jnp.concatenate(
        [jnp.einsum("blm,bld->bmd", k, v), jnp.sum(k, axis=1)[..., None]], axis=-1
    )
    buf = jnp.einsum("blm,bmd->bld", q, buf)
    out = buf[:, :, :-1] / buf[:, :, -1:]
    out = out.reshape(B, h, L, d_k).transpose(0, 2, 1, 3).reshape(B, L, d_model)
    return _linear(out, weights[3], biases[3])


# ---------------------------------- main ----------------------------------- #
if __name__ == "__main__":
    B, L, d_model, h, m = 2, 8, 32, 4, 16
    d_k = d_model // h

    key = jax.random.PRNGKey(0)
    keys = jax.random.split(key, 10)
    kx, korf, kw = keys[0], keys[1], keys[2:]

    x = jax.random.normal(kx, (B, L, d_model), dtype=jnp.float32)
    orf = create_orf(korf, d_k, m)           # (m, d_k), like the torch buffer

    weights = [
        jax.random.normal(kw[2 * i], (d_model, d_model), dtype=jnp.float32)
        / math.sqrt(d_model)
        for i in range(4)
    ]
    biases = [
        0.01 * jax.random.normal(kw[2 * i + 1], (d_model,), dtype=jnp.float32)
        for i in range(4)
    ]

    fwd = jax.jit(functools.partial(fast_self_attention_forward, h=h))
    out = jax.block_until_ready(fwd(x, weights, biases, orf))

    ref = _reference_forward(x, weights, biases, orf, h=h)
    assert out.shape == (B, L, d_model)
    # Tolerance loosened vs exact f32 because the kernel uses the EUP
    # approximate reciprocal (pl.reciprocal(..., approx=True)).
    assert jnp.allclose(out, ref, atol=1e-2, rtol=1e-2), "Pallas output mismatch"

    print("KERNEL_OK")
</pallas_src>

<mosaic_0001>
module attributes {stable_mosaic.version = 11 : i64} {
  func.func @_fast_attn_kernel(%arg0: i32, %arg1: memref<1x8x32xf32, #tpu.memory_space<vmem>>, %arg2: memref<1x8x32xf32, #tpu.memory_space<vmem>>, %arg3: memref<1x8x32xf32, #tpu.memory_space<vmem>>, %arg4: memref<8x16xf32, #tpu.memory_space<vmem>>, %arg5: memref<1x8x32xf32, #tpu.memory_space<vmem>>) attributes {dimension_semantics = [#tpu.dimension_semantics<parallel>], iteration_bounds = array<i64: 2>, scalar_prefetch = 0 : i64, scratch_operands = 0 : i64, tpu.core_type = #tpu.core_type<tc>, window_params = [{transform_indices = @transform_0, window_bounds = array<i64: 1, 8, 32>}, {transform_indices = @transform_1, window_bounds = array<i64: 1, 8, 32>}, {transform_indices = @transform_2, window_bounds = array<i64: 1, 8, 32>}, {pipeline_mode = #tpu.pipeline_mode<synchronous>, transform_indices = @transform_3, window_bounds = array<i64: 8, 16>}, {transform_indices = @transform_4, window_bounds = array<i64: 1, 8, 32>}]} {
    %c0 = arith.constant 0 : index
    %c0_0 = arith.constant 0 : index
    %c0_1 = arith.constant 0 : index
    %0 = vector.load %arg1[%c0, %c0_0, %c0_1] : memref<1x8x32xf32, #tpu.memory_space<vmem>>, vector<1x8x32xf32>
    %1 = vector.shape_cast %0 : vector<1x8x32xf32> to vector<8x32xf32>
    %c0_2 = arith.constant 0 : index
    %c0_3 = arith.constant 0 : index
    %c0_4 = arith.constant 0 : index
    %2 = vector.load %arg2[%c0_2, %c0_3, %c0_4] : memref<1x8x32xf32, #tpu.memory_space<vmem>>, vector<1x8x32xf32>
    %3 = vector.shape_cast %2 : vector<1x8x32xf32> to vector<8x32xf32>
    %c0_5 = arith.constant 0 : index
    %c0_6 = arith.constant 0 : index
    %c0_7 = arith.constant 0 : index
    %4 = vector.load %arg3[%c0_5, %c0_6, %c0_7] : memref<1x8x32xf32, #tpu.memory_space<vmem>>, vector<1x8x32xf32>
    %5 = vector.shape_cast %4 : vector<1x8x32xf32> to vector<8x32xf32>
    %c0_8 = arith.constant 0 : index
    %c0_9 = arith.constant 0 : index
    %6 = vector.load %arg4[%c0_8, %c0_9] : memref<8x16xf32, #tpu.memory_space<vmem>>, vector<8x16xf32>
    %cst = arith.constant 1.000000e+00 : f32
    %7 = vector.broadcast %cst : f32 to vector<8x1xf32>
    %8 = vector.extract_strided_slice %1 {offsets = [0, 0], sizes = [8, 8], strides = [1, 1]} : vector<8x32xf32> to vector<8x8xf32>
    %9 = vector.extract_strided_slice %3 {offsets = [0, 0], sizes = [8, 8], strides = [1, 1]} : vector<8x32xf32> to vector<8x8xf32>
    %10 = vector.extract_strided_slice %5 {offsets = [0, 0], sizes = [8, 8], strides = [1, 1]} : vector<8x32xf32> to vector<8x8xf32>
    %cst_10 = arith.constant dense<0.000000e+00> : vector<8x16xf32>
    %11 = tpu.matmul %8, %6, %cst_10 {dimension_numbers = #tpu.dot_dimension_numbers<[1], [0], [0], [1], [0, 0, 1, 1], [], []>} : vector<8x8xf32>, vector<8x16xf32>, vector<8x16xf32> -> vector<8x16xf32>
    %cst_11 = arith.constant 5.000000e-01 : f32
    %12 = vector.broadcast %cst_11 : f32 to vector<8x16xf32>
    %13 = arith.mulf %11, %12 : vector<8x16xf32>
    %14 = arith.mulf %8, %8 : vector<8x8xf32>
    %cst_12 = arith.constant dense<0.000000e+00> : vector<8xf32>
    %15 = vector.multi_reduction <add>, %14, %cst_12 [1] : vector<8x8xf32> to vector<8xf32>
    %16 = vector.shape_cast %15 : vector<8xf32> to vector<8x1xf32>
    %cst_13 = arith.constant 1.250000e-01 : f32
    %17 = vector.broadcast %cst_13 : f32 to vector<8x1xf32>
    %18 = arith.mulf %16, %17 : vector<8x1xf32>
    %19 = vector.broadcast %18 : vector<8x1xf32> to vector<8x16xf32>
    %20 = arith.subf %13, %19 : vector<8x16xf32>
    %21 = math.exp %20 : vector<8x16xf32>
    %cst_14 = arith.constant 9.99999997E-7 : f32
    %22 = vector.broadcast %cst_14 : f32 to vector<8x16xf32>
    %23 = arith.addf %21, %22 : vector<8x16xf32>
    %cst_15 = arith.constant 0.353553385 : f32
    %24 = vector.broadcast %cst_15 : f32 to vector<8x16xf32>
    %25 = arith.mulf %23, %24 : vector<8x16xf32>
    %cst_16 = arith.constant dense<0.000000e+00> : vector<8x16xf32>
    %26 = tpu.matmul %9, %6, %cst_16 {dimension_numbers = #tpu.dot_dimension_numbers<[1], [0], [0], [1], [0, 0, 1, 1], [], []>} : vector<8x8xf32>, vector<8x16xf32>, vector<8x16xf32> -> vector<8x16xf32>
    %cst_17 = arith.constant 5.000000e-01 : f32
    %27 = vector.broadcast %cst_17 : f32 to vector<8x16xf32>
    %28 = arith.mulf %26, %27 : vector<8x16xf32>
    %29 = arith.mulf %9, %9 : vector<8x8xf32>
    %cst_18 = arith.constant dense<0.000000e+00> : vector<8xf32>
    %30 = vector.multi_reduction <add>, %29, %cst_18 [1] : vector<8x8xf32> to vector<8xf32>
    %31 = vector.shape_cast %30 : vector<8xf32> to vector<8x1xf32>
    %cst_19 = arith.constant 1.250000e-01 : f32
    %32 = vector.broadcast %cst_19 : f32 to vector<8x1xf32>
    %33 = arith.mulf %31, %32 : vector<8x1xf32>
    %34 = vector.broadcast %33 : vector<8x1xf32> to vector<8x16xf32>
    %35 = arith.subf %28, %34 : vector<8x16xf32>
    %36 = math.exp %35 : vector<8x16xf32>
    %cst_20 = arith.constant 9.99999997E-7 : f32
    %37 = vector.broadcast %cst_20 : f32 to vector<8x16xf32>
    %38 = arith.addf %36, %37 : vector<8x16xf32>
    %cst_21 = arith.constant 0.353553385 : f32
    %39 = vector.broadcast %cst_21 : f32 to vector<8x16xf32>
    %40 = arith.mulf %38, %39 : vector<8x16xf32>
    %41 = tpu.concatenate %10, %7 in 1 : vector<8x8xf32>, vector<8x1xf32> -> vector<8x9xf32>
    %cst_22 = arith.constant dense<0.000000e+00> : vector<16x9xf32>
    %42 = tpu.matmul %40, %41, %cst_22 {dimension_numbers = #tpu.dot_dimension_numbers<[0], [0], [1], [1], [0, 1, 1, 1], [], []>} : vector<8x16xf32>, vector<8x9xf32>, vector<16x9xf32> -> vector<16x9xf32>
    %cst_23 = arith.constant dense<0.000000e+00> : vector<8x9xf32>
    %43 = tpu.matmul %25, %42, %cst_23 {dimension_numbers = #tpu.dot_dimension_numbers<[1], [0], [0], [1], [0, 0, 1, 1], [], []>} : vector<8x16xf32>, vector<16x9xf32>, vector<8x9xf32> -> vector<8x9xf32>
    %44 = vector.extract_strided_slice %43 {offsets = [0, 0], sizes = [8, 8], strides = [1, 1]} : vector<8x9xf32> to vector<8x8xf32>
    %45 = vector.extract_strided_slice %43 {offsets = [0, 8], sizes = [8, 1], strides = [1, 1]} : vector<8x9xf32> to vector<8x1xf32>
    %46 = tpu.reciprocal %45 {approx = true} : vector<8x1xf32> -> vector<8x1xf32>
    %47 = vector.broadcast %46 : vector<8x1xf32> to vector<8x8xf32>
    %48 = arith.mulf %44, %47 : vector<8x8xf32>
    %49 = vector.extract_strided_slice %1 {offsets = [0, 8], sizes = [8, 8], strides = [1, 1]} : vector<8x32xf32> to vector<8x8xf32>
    %50 = vector.extract_strided_slice %3 {offsets = [0, 8], sizes = [8, 8], strides = [1, 1]} : vector<8x32xf32> to vector<8x8xf32>
    %51 = vector.extract_strided_slice %5 {offsets = [0, 8], sizes = [8, 8], strides = [1, 1]} : vector<8x32xf32> to vector<8x8xf32>
    %cst_24 = arith.constant dense<0.000000e+00> : vector<8x16xf32>
    %52 = tpu.matmul %49, %6, %cst_24 {dimension_numbers = #tpu.dot_dimension_numbers<[1], [0], [0], [1], [0, 0, 1, 1], [], []>} : vector<8x8xf32>, vector<8x16xf32>, vector<8x16xf32> -> vector<8x16xf32>
    %cst_25 = arith.constant 5.000000e-01 : f32
    %53 = vector.broadcast %cst_25 : f32 to vector<8x16xf32>
    %54 = arith.mulf %52, %53 : vector<8x16xf32>
    %55 = arith.mulf %49, %49 : vector<8x8xf32>
    %cst_26 = arith.constant dense<0.000000e+00> : vector<8xf32>
    %56 = vector.multi_reduction <add>, %55, %cst_26 [1] : vector<8x8xf32> to vector<8xf32>
    %57 = vector.shape_cast %56 : vector<8xf32> to vector<8x1xf32>
    %cst_27 = arith.constant 1.250000e-01 : f32
    %58 = vector.broadcast %cst_27 : f32 to vector<8x1xf32>
    %59 = arith.mulf %57, %58 : vector<8x1xf32>
    %60 = vector.broadcast %59 : vector<8x1xf32> to vector<8x16xf32>
    %61 = arith.subf %54, %60 : vector<8x16xf32>
    %62 = math.exp %61 : vector<8x16xf32>
    %cst_28 = arith.constant 9.99999997E-7 : f32
    %63 = vector.broadcast %cst_28 : f32 to vector<8x16xf32>
    %64 = arith.addf %62, %63 : vector<8x16xf32>
    %cst_29 = arith.constant 0.353553385 : f32
    %65 = vector.broadcast %cst_29 : f32 to vector<8x16xf32>
    %66 = arith.mulf %64, %65 : vector<8x16xf32>
    %cst_30 = arith.constant dense<0.000000e+00> : vector<8x16xf32>
    %67 = tpu.matmul %50, %6, %cst_30 {dimension_numbers = #tpu.dot_dimension_numbers<[1], [0], [0], [1], [0, 0, 1, 1], [], []>} : vector<8x8xf32>, vector<8x16xf32>, vector<8x16xf32> -> vector<8x16xf32>
    %cst_31 = arith.constant 5.000000e-01 : f32
    %68 = vector.broadcast %cst_31 : f32 to vector<8x16xf32>
    %69 = arith.mulf %67, %68 : vector<8x16xf32>
    %70 = arith.mulf %50, %50 : vector<8x8xf32>
    %cst_32 = arith.constant dense<0.000000e+00> : vector<8xf32>
    %71 = vector.multi_reduction <add>, %70, %cst_32 [1] : vector<8x8xf32> to vector<8xf32>
    %72 = vector.shape_cast %71 : vector<8xf32> to vector<8x1xf32>
    %cst_33 = arith.constant 1.250000e-01 : f32
    %73 = vector.broadcast %cst_33 : f32 to vector<8x1xf32>
    %74 = arith.mulf %72, %73 : vector<8x1xf32>
    %75 = vector.broadcast %74 : vector<8x1xf32> to vector<8x16xf32>
    %76 = arith.subf %69, %75 : vector<8x16xf32>
    %77 = math.exp %76 : vector<8x16xf32>
    %cst_34 = arith.constant 9.99999997E-7 : f32
    %78 = vector.broadcast %cst_34 : f32 to vector<8x16xf32>
    %79 = arith.addf %77, %78 : vector<8x16xf32>
    %cst_35 = arith.constant 0.353553385 : f32
    %80 = vector.broadcast %cst_35 : f32 to vector<8x16xf32>
    %81 = arith.mulf %79, %80 : vector<8x16xf32>
    %82 = tpu.concatenate %51, %7 in 1 : vector<8x8xf32>, vector<8x1xf32> -> vector<8x9xf32>
    %cst_36 = arith.constant dense<0.000000e+00> : vector<16x9xf32>
    %83 = tpu.matmul %81, %82, %cst_36 {dimension_numbers = #tpu.dot_dimension_numbers<[0], [0], [1], [1], [0, 1, 1, 1], [], []>} : vector<8x16xf32>, vector<8x9xf32>, vector<16x9xf32> -> vector<16x9xf32>
    %cst_37 = arith.constant dense<0.000000e+00> : vector<8x9xf32>
    %84 = tpu.matmul %66, %83, %cst_37 {dimension_numbers = #tpu.dot_dimension_numbers<[1], [0], [0], [1], [0, 0, 1, 1], [], []>} : vector<8x16xf32>, vector<16x9xf32>, vector<8x9xf32> -> vector<8x9xf32>
    %85 = vector.extract_strided_slice %84 {offsets = [0, 0], sizes = [8, 8], strides = [1, 1]} : vector<8x9xf32> to vector<8x8xf32>
    %86 = vector.extract_strided_slice %84 {offsets = [0, 8], sizes = [8, 1], strides = [1, 1]} : vector<8x9xf32> to vector<8x1xf32>
    %87 = tpu.reciprocal %86 {approx = true} : vector<8x1xf32> -> vector<8x1xf32>
    %88 = vector.broadcast %87 : vector<8x1xf32> to vector<8x8xf32>
    %89 = arith.mulf %85, %88 : vector<8x8xf32>
    %90 = vector.extract_strided_slice %1 {offsets = [0, 16], sizes = [8, 8], strides = [1, 1]} : vector<8x32xf32> to vector<8x8xf32>
    %91 = vector.extract_strided_slice %3 {offsets = [0, 16], sizes = [8, 8], strides = [1, 1]} : vector<8x32xf32> to vector<8x8xf32>
    %92 = vector.extract_strided_slice %5 {offsets = [0, 16], sizes = [8, 8], strides = [1, 1]} : vector<8x32xf32> to vector<8x8xf32>
    %cst_38 = arith.constant dense<0.000000e+00> : vector<8x16xf32>
    %93 = tpu.matmul %90, %6, %cst_38 {dimension_numbers = #tpu.dot_dimension_numbers<[1], [0], [0], [1], [0, 0, 1, 1], [], []>} : vector<8x8xf32>, vector<8x16xf32>, vector<8x16xf32> -> vector<8x16xf32>
    %cst_39 = arith.constant 5.000000e-01 : f32
    %94 = vector.broadcast %cst_39 : f32 to vector<8x16xf32>
    %95 = arith.mulf %93, %94 : vector<8x16xf32>
    %96 = arith.mulf %90, %90 : vector<8x8xf32>
    %cst_40 = arith.constant dense<0.000000e+00> : vector<8xf32>
    %97 = vector.multi_reduction <add>, %96, %cst_40 [1] : vector<8x8xf32> to vector<8xf32>
    %98 = vector.shape_cast %97 : vector<8xf32> to vector<8x1xf32>
    %cst_41 = arith.constant 1.250000e-01 : f32
    %99 = vector.broadcast %cst_41 : f32 to vector<8x1xf32>
    %100 = arith.mulf %98, %99 : vector<8x1xf32>
    %101 = vector.broadcast %100 : vector<8x1xf32> to vector<8x16xf32>
    %102 = arith.subf %95, %101 : vector<8x16xf32>
    %103 = math.exp %102 : vector<8x16xf32>
    %cst_42 = arith.constant 9.99999997E-7 : f32
    %104 = vector.broadcast %cst_42 : f32 to vector<8x16xf32>
    %105 = arith.addf %103, %104 : vector<8x16xf32>
    %cst_43 = arith.constant 0.353553385 : f32
    %106 = vector.broadcast %cst_43 : f32 to vector<8x16xf32>
    %107 = arith.mulf %105, %106 : vector<8x16xf32>
    %cst_44 = arith.constant dense<0.000000e+00> : vector<8x16xf32>
    %108 = tpu.matmul %91, %6, %cst_44 {dimension_numbers = #tpu.dot_dimension_numbers<[1], [0], [0], [1], [0, 0, 1, 1], [], []>} : vector<8x8xf32>, vector<8x16xf32>, vector<8x16xf32> -> vector<8x16xf32>
    %cst_45 = arith.constant 5.000000e-01 : f32
    %109 = vector.broadcast %cst_45 : f32 to vector<8x16xf32>
    %110 = arith.mulf %108, %109 : vector<8x16xf32>
    %111 = arith.mulf %91, %91 : vector<8x8xf32>
    %cst_46 = arith.constant dense<0.000000e+00> : vector<8xf32>
    %112 = vector.multi_reduction <add>, %111, %cst_46 [1] : vector<8x8xf32> to vector<8xf32>
    %113 = vector.shape_cast %112 : vector<8xf32> to vector<8x1xf32>
    %cst_47 = arith.constant 1.250000e-01 : f32
    %114 = vector.broadcast %cst_47 : f32 to vector<8x1xf32>
    %115 = arith.mulf %113, %114 : vector<8x1xf32>
    %116 = vector.broadcast %115 : vector<8x1xf32> to vector<8x16xf32>
    %117 = arith.subf %110, %116 : vector<8x16xf32>
    %118 = math.exp %117 : vector<8x16xf32>
    %cst_48 = arith.constant 9.99999997E-7 : f32
    %119 = vector.broadcast %cst_48 : f32 to vector<8x16xf32>
    %120 = arith.addf %118, %119 : vector<8x16xf32>
    %cst_49 = arith.constant 0.353553385 : f32
    %121 = vector.broadcast %cst_49 : f32 to vector<8x16xf32>
    %122 = arith.mulf %120, %121 : vector<8x16xf32>
    %123 = tpu.concatenate %92, %7 in 1 : vector<8x8xf32>, vector<8x1xf32> -> vector<8x9xf32>
    %cst_50 = arith.constant dense<0.000000e+00> : vector<16x9xf32>
    %124 = tpu.matmul %122, %123, %cst_50 {dimension_numbers = #tpu.dot_dimension_numbers<[0], [0], [1], [1], [0, 1, 1, 1], [], []>} : vector<8x16xf32>, vector<8x9xf32>, vector<16x9xf32> -> vector<16x9xf32>
    %cst_51 = arith.constant dense<0.000000e+00> : vector<8x9xf32>
    %125 = tpu.matmul %107, %124, %cst_51 {dimension_numbers = #tpu.dot_dimension_numbers<[1], [0], [0], [1], [0, 0, 1, 1], [], []>} : vector<8x16xf32>, vector<16x9xf32>, vector<8x9xf32> -> vector<8x9xf32>
    %126 = vector.extract_strided_slice %125 {offsets = [0, 0], sizes = [8, 8], strides = [1, 1]} : vector<8x9xf32> to vector<8x8xf32>
    %127 = vector.extract_strided_slice %125 {offsets = [0, 8], sizes = [8, 1], strides = [1, 1]} : vector<8x9xf32> to vector<8x1xf32>
    %128 = tpu.reciprocal %127 {approx = true} : vector<8x1xf32> -> vector<8x1xf32>
    %129 = vector.broadcast %128 : vector<8x1xf32> to vector<8x8xf32>
    %130 = arith.mulf %126, %129 : vector<8x8xf32>
    %131 = vector.extract_strided_slice %1 {offsets = [0, 24], sizes = [8, 8], strides = [1, 1]} : vector<8x32xf32> to vector<8x8xf32>
    %132 = vector.extract_strided_slice %3 {offsets = [0, 24], sizes = [8, 8], strides = [1, 1]} : vector<8x32xf32> to vector<8x8xf32>
    %133 = vector.extract_strided_slice %5 {offsets = [0, 24], sizes = [8, 8], strides = [1, 1]} : vector<8x32xf32> to vector<8x8xf32>
    %cst_52 = arith.constant dense<0.000000e+00> : vector<8x16xf32>
    %134 = tpu.matmul %131, %6, %cst_52 {dimension_numbers = #tpu.dot_dimension_numbers<[1], [0], [0], [1], [0, 0, 1, 1], [], []>} : vector<8x8xf32>, vector<8x16xf32>, vector<8x16xf32> -> vector<8x16xf32>
    %cst_53 = arith.constant 5.000000e-01 : f32
    %135 = vector.broadcast %cst_53 : f32 to vector<8x16xf32>
    %136 = arith.mulf %134, %135 : vector<8x16xf32>
    %137 = arith.mulf %131, %131 : vector<8x8xf32>
    %cst_54 = arith.constant dense<0.000000e+00> : vector<8xf32>
    %138 = vector.multi_reduction <add>, %137, %cst_54 [1] : vector<8x8xf32> to vector<8xf32>
    %139 = vector.shape_cast %138 : vector<8xf32> to vector<8x1xf32>
    %cst_55 = arith.constant 1.250000e-01 : f32
    %140 = vector.broadcast %cst_55 : f32 to vector<8x1xf32>
    %141 = arith.mulf %139, %140 : vector<8x1xf32>
    %142 = vector.broadcast %141 : vector<8x1xf32> to vector<8x16xf32>
    %143 = arith.subf %136, %142 : vector<8x16xf32>
    %144 = math.exp %143 : vector<8x16xf32>
    %cst_56 = arith.constant 9.99999997E-7 : f32
    %145 = vector.broadcast %cst_56 : f32 to vector<8x16xf32>
    %146 = arith.addf %144, %145 : vector<8x16xf32>
    %cst_57 = arith.constant 0.353553385 : f32
    %147 = vector.broadcast %cst_57 : f32 to vector<8x16xf32>
    %148 = arith.mulf %146, %147 : vector<8x16xf32>
    %cst_58 = arith.constant dense<0.000000e+00> : vector<8x16xf32>
    %149 = tpu.matmul %132, %6, %cst_58 {dimension_numbers = #tpu.dot_dimension_numbers<[1], [0], [0], [1], [0, 0, 1, 1], [], []>} : vector<8x8xf32>, vector<8x16xf32>, vector<8x16xf32> -> vector<8x16xf32>
    %cst_59 = arith.constant 5.000000e-01 : f32
    %150 = vector.broadcast %cst_59 : f32 to vector<8x16xf32>
    %151 = arith.mulf %149, %150 : vector<8x16xf32>
    %152 = arith.mulf %132, %132 : vector<8x8xf32>
    %cst_60 = arith.constant dense<0.000000e+00> : vector<8xf32>
    %153 = vector.multi_reduction <add>, %152, %cst_60 [1] : vector<8x8xf32> to vector<8xf32>
    %154 = vector.shape_cast %153 : vector<8xf32> to vector<8x1xf32>
    %cst_61 = arith.constant 1.250000e-01 : f32
    %155 = vector.broadcast %cst_61 : f32 to vector<8x1xf32>
    %156 = arith.mulf %154, %155 : vector<8x1xf32>
    %157 = vector.broadcast %156 : vector<8x1xf32> to vector<8x16xf32>
    %158 = arith.subf %151, %157 : vector<8x16xf32>
    %159 = math.exp %158 : vector<8x16xf32>
    %cst_62 = arith.constant 9.99999997E-7 : f32
    %160 = vector.broadcast %cst_62 : f32 to vector<8x16xf32>
    %161 = arith.addf %159, %160 : vector<8x16xf32>
    %cst_63 = arith.constant 0.353553385 : f32
    %162 = vector.broadcast %cst_63 : f32 to vector<8x16xf32>
    %163 = arith.mulf %161, %162 : vector<8x16xf32>
    %164 = tpu.concatenate %133, %7 in 1 : vector<8x8xf32>, vector<8x1xf32> -> vector<8x9xf32>
    %cst_64 = arith.constant dense<0.000000e+00> : vector<16x9xf32>
    %165 = tpu.matmul %163, %164, %cst_64 {dimension_numbers = #tpu.dot_dimension_numbers<[0], [0], [1], [1], [0, 1, 1, 1], [], []>} : vector<8x16xf32>, vector<8x9xf32>, vector<16x9xf32> -> vector<16x9xf32>
    %cst_65 = arith.constant dense<0.000000e+00> : vector<8x9xf32>
    %166 = tpu.matmul %148, %165, %cst_65 {dimension_numbers = #tpu.dot_dimension_numbers<[1], [0], [0], [1], [0, 0, 1, 1], [], []>} : vector<8x16xf32>, vector<16x9xf32>, vector<8x9xf32> -> vector<8x9xf32>
    %167 = vector.extract_strided_slice %166 {offsets = [0, 0], sizes = [8, 8], strides = [1, 1]} : vector<8x9xf32> to vector<8x8xf32>
    %168 = vector.extract_strided_slice %166 {offsets = [0, 8], sizes = [8, 1], strides = [1, 1]} : vector<8x9xf32> to vector<8x1xf32>
    %169 = tpu.reciprocal %168 {approx = true} : vector<8x1xf32> -> vector<8x1xf32>
    %170 = vector.broadcast %169 : vector<8x1xf32> to vector<8x8xf32>
    %171 = arith.mulf %167, %170 : vector<8x8xf32>
    %172 = tpu.concatenate %48, %89, %130, %171 in 1 : vector<8x8xf32>, vector<8x8xf32>, vector<8x8xf32>, vector<8x8xf32> -> vector<8x32xf32>
    %c0_66 = arith.constant 0 : index
    %c0_67 = arith.constant 0 : index
    %c0_68 = arith.constant 0 : index
    %173 = vector.load %arg5[%c0_66, %c0_67, %c0_68] : memref<1x8x32xf32, #tpu.memory_space<vmem>>, vector<1x8x32xf32>
    %174 = vector.shape_cast %173 : vector<1x8x32xf32> to vector<8x32xf32>
    %175 = vector.shape_cast %172 : vector<8x32xf32> to vector<1x8x32xf32>
    tpu.vector_store %arg5[%c0_66, %c0_67, %c0_68], %175 {strides = array<i32>} : memref<1x8x32xf32, #tpu.memory_space<vmem>>, vector<1x8x32xf32>,
    return
  }
  func.func @transform_0(%arg0: i32) -> (i32, i32, i32) {
    %c0_i32 = arith.constant 0 : i32
    %c0_i32_0 = arith.constant 0 : i32
    %c0_i32_1 = arith.constant 0 : i32
    return %arg0, %c0_i32, %c0_i32_0 : i32, i32, i32
  }
  func.func @transform_1(%arg0: i32) -> (i32, i32, i32) {
    %c0_i32 = arith.constant 0 : i32
    %c0_i32_0 = arith.constant 0 : i32
    %c0_i32_1 = arith.constant 0 : i32
    return %arg0, %c0_i32, %c0_i32_0 : i32, i32, i32
  }
  func.func @transform_2(%arg0: i32) -> (i32, i32, i32) {
    %c0_i32 = arith.constant 0 : i32
    %c0_i32_0 = arith.constant 0 : i32
    %c0_i32_1 = arith.constant 0 : i32
    return %arg0, %c0_i32, %c0_i32_0 : i32, i32, i32
  }
  func.func @transform_3(%arg0: i32) -> (i32, i32) {
    %c0_i32 = arith.constant 0 : i32
    %c0_i32_0 = arith.constant 0 : i32
    %c0_i32_1 = arith.constant 0 : i32
    return %c0_i32, %c0_i32_0 : i32, i32
  }
  func.func @transform_4(%arg0: i32) -> (i32, i32, i32) {
    %c0_i32 = arith.constant 0 : i32
    %c0_i32_0 = arith.constant 0 : i32
    %c0_i32_1 = arith.constant 0 : i32
    return %arg0, %c0_i32, %c0_i32_0 : i32, i32, i32
  }
}

</mosaic_0001>

<bundles_post_ra>
// kernel: fast_self_attention_forward.1
= control target key start
LH: loop header
LB: loop body
LE: loop exit
PB: predicated region body
PF: predicated region fallthrough
CT: control target
= control target key end

     0   :  { %s2064_s15 = smov 0   ;;  %s2227_s0 = inlined_call_operand.vmem [shape: f32[2,8,32], index: 0, kind: input, shape index: {}]   ;;  %s2228_s1 = inlined_call_operand.vmem [shape: f32[2,8,32], index: 1, kind: input, shape index: {}]   ;;  %s2229_s2 = inlined_call_operand.vmem [shape: f32[2,8,32], index: 2, kind: input, shape index: {}]   ;;  %s2230_s3 = inlined_call_operand.vmem [shape: f32[8,16], index: 3, kind: input, shape index: {}]   ;;  %s2231_s4 = inlined_call_operand.vmem [shape: f32[2,8,32], index: 4, kind: output, shape index: {}]  }
   0x1 LB: > { %s1806_s16 = sadd.s32 4294967295, %s2027_s15   ;;  %p1810_p0 = scmp.ge.s32.totalorder %s2027_s15, 1  ;;  %s2027_s15 = sphi %s2064_s15, %s14_s15  }
   0x2   : > { %p179_p1 = scmp.lt.s32.totalorder %s2027_s15, 3 }
   0x4   : > { %p180_p2 = pnand %p1810_p0, %p179_p1 }
   0x5   : > { %v2075_v0 = vld [vmem:[%s2230_s3] sm:$0xff] (!%p180_p2)  ;;  %p211_p3 = scmp.lt.s32.totalorder (!%p180_p2), %s1806_s16, 1  ;;  %v2029_v1 = vmov (!%p180_p2), 0.0   ;;  %vm2030_vm0 = vmmov (!%p180_p2), 0   ;;  %vm231_vm1 = vcmask (!%p180_p2), 64512   ;;  %s2031_s29 = smov (!%p180_p2), 120  }
   0x6   : > { %183 = sbr.rel (%p180_p2) target bundleno = 2835 (0xb13), region = 36  ;;  %1882 = vmatprep.subr.mxu1 (!%p180_p2), %v2029_v1  ;;  %1884 = vmatprep.mubr.msk.f32.mxu1 (!%p180_p2), %vm2030_vm0, %v2029_v1  ;;  %v2032_v24 = vmov (!%p180_p2), 0.0|0.0   ;;  %vm514_vm2 = vcmask (!%p180_p2), 130048   ;;  %s2033_s30 = smov (!%p180_p2), 112   ;;  %vm1725_vm3 = vcmask (!%p180_p2), 195584   ;;  %vm1727_vm4 = vcmask (!%p180_p2), 261120  }
   0x7   : > { %1883 = vmatpush3.msra.mxu1 (!%p180_p2), %v2075_v0  ;;  %1877 = vmatprep.subr.mxu0 (!%p180_p2), %v2029_v1  ;;  %s2034_s5 = smov (!%p180_p2), 104   ;;  %s2036_s6 = smov (!%p180_p2), 8  }
   0x8   : > { %1878 = vmatpush3.msra.mxu0 (!%p180_p2), %v2075_v0  ;;  %1879 = vmatprep.mubr.msk.f32.mxu0 (!%p180_p2), %vm2030_vm0, %v2029_v1  ;;  %s2037_s7 = smov (!%p180_p2), 16   ;;  %s2038_s8 = smov (!%p180_p2), 24  }
   0x9   : > { %1965 = vmatprep.subr.bf16.mxu1 (!%p180_p2), %v2032_v24 }
   0xd   : > { %s2233_s16 = smov (!%p211_p3, %s1806_s16), 1 }
   0xe   : > { %s2085_s19 = sshll.u32 %s2233_s16, 3 }
   0xf   : > { %s218_s22 = scalar_lea.vmem %s2228_s1, %s2085_s19  ;;  %s214_s25 = scalar_lea.vmem %s2227_s0, %s2085_s19 }
  0x10   : > { %v2091_v2 = vld [vmem:[%s218_s22] sm:$0xff]  ;;  %s222_s28 = scalar_lea.vmem %s2229_s2, %s2085_s19  ;;  %s226_s11 = scalar_lea.vmem %s2231_s4, %s2085_s19 }
  0x11   : > { %1885 = vmatmul.mubr.msk.f32.vlgmr.msra.gmra.mrb[0].mxu1 %vm231_vm1, %v2091_v2  ;;  %v2097_v3 = vmul.f32 %v2091_v2, %v2091_v2  ;;  %v2107_v5 = vld [vmem:[%s214_s25] sm:$0xff] }
  0x12   : > { %1896 = vmatprep.mubr.msk.f32.mxu1 %vm2030_vm0, %v2029_v1  ;;  %1880 = vmatmul.mubr.msk.f32.vlgmr.msra.gmra.mrb[0].mxu0 %vm231_vm1, %v2107_v5  ;;  %v2115_v16 = vld [vmem:[%s222_s28] sm:$0xff]  ;;  %v2121_v18 = vmul.f32 %v2107_v5, %v2107_v5 }
  0x13   : > { %v391_v4 = vsel %vm231_vm1, %v2097_v3, 0.0  ;;  %v400_v17 = vsel %vm231_vm1, %v2115_v16, 1.0 }
  0x14   : > { %392 = vadd.xlane.f32.xlu0 %v391_v4  ;;  %1887 = vmatprep.subr.mxu0 %v400_v17  ;;  %v307_v19 = vsel %vm231_vm1, %v2121_v18, 0.0 }
  0x15   : > { %1888 = vmatpush3.msra.mxu0 %v400_v17  ;;  %308 = vadd.xlane.f32.xlu1 %v307_v19 }
  0x16   : > { %1899 = vmatprep.subr.mxu0 %v2029_v1 }
  0x26   : > { %683 = vrot.lane.b32.xlu1 %v2091_v2, %s2031_s29 }
  0x2a   : > { %759 = vrot.lane.b32.xlu1 %v2097_v3, %s2031_s29 }
  0xa1   : > { %v393_v6 = vpop.xlane.xlu0 %392 }
  0xa2   : > { %v394_v7 = vmul.f32 0.125, %v393_v6  ;;  %v309_v25 = vpop.xlane.xlu1 %308 }
  0xa3   : > { %v310_v30 = vmul.f32 0.125, %v309_v25 }
  0xa6   : > { %v684_v26 = vpop.permute.xlu1 %683 }
  0xaa   : > { %v760_v27 = vpop.permute.xlu1 %759 }
  0xab   : > { %v762_v28 = vsel %vm231_vm1, %v760_v27, 0.0 }
  0xac   : > { %763 = vadd.xlane.f32.xlu1 %v762_v28 }
  0xbd   : > { %772 = vrot.lane.b32.xlu1 %v2115_v16, %s2031_s29 }
  0xe4   : > { %v385_v8 = vpop.f32.mrb[0].mxu1 }
  0xe5   : > { %v389_v9 = vmul.f32 0.5, %v385_v8  ;;  %v1886_v10 = vpop.f32.mrb[1].mxu1  ;;  %v301_v20 = vpop.f32.mrb[0].mxu0 }
  0xe6   : > { %v1881_v21 = vpop.f32.mrb[1].mxu0  ;;  %v305_v29 = vmul.f32 0.5, %v301_v20 }
  0xe7   : > { %v395_v11 = vsub.f32 %v389_v9, %v394_v7 }
  0xe8   : > { %v311_v31 = vsub.f32 %v305_v29, %v310_v30 }
  0xe9   : > { %v396_v12 = vmul.f32 1.442695, %v395_v11 }
  0xea   : > { %v312_v32 = vmul.f32 1.442695, %v311_v31 }
  0xeb   : > { %1997 = vpow2.f32 %v396_v12 }
  0xec   : > { %1999 = vpow2.f32 %v312_v32 }
  0xf5   : > { %v1998_v13 = vpop.eup %1997 }
  0xf6   : > { %v398_v14 = vadd.f32 1e-06, %v1998_v13  ;;  %v2000_v33 = vpop.eup %1999 }
  0xf7   : > { %v314_v34 = vadd.f32 1e-06, %v2000_v33 }
  0xf8   : > { %v399_v15 = vmul.f32 0.35355338, %v398_v14 }
  0xf9   : > { %v315_v38 = vmul.f32 0.35355338, %v314_v34 }
  0xfa   : > { %401 = vxpose.xlu0.b32.start.end [1/1] (short) (narrow) %v399_v15, 16 }
 0x127   : > { %595 = vrot.lane.b32.xlu0 %v2107_v5, %s2031_s29 }
 0x12b   : > { %671 = vrot.lane.b32.xlu0 %v2121_v18, %s2031_s29 }
 0x139   : > { %v764_v39 = vpop.xlane.xlu1 %763 }
 0x13a   : > { %v765_v47 = vmul.f32 0.125, %v764_v39 }
 0x13d   : > { %v773_v40 = vpop.permute.xlu1 %772 }
 0x13e   : > { %v775_v42 = vsel %vm231_vm1, %v773_v40, 1.0 }
 0x17a   : > { %v417_v22 = vpop.trf.xlu0 }
 0x17b   : > { %1889 = vmatprep.mubr.msk.f32.mxu0 %vm231_vm1, %v417_v22  ;;  %v2035_v22 = vmov 8  }
 0x17c   : > { %1995 = vset.pattern.permute.xlu0 %v2035_v22 }
 0x17e   : > { %v418_v23 = vpop.trf.xlu0 }
 0x17f   : > { %1890 = vmatmul.mubr.msk.f32.vlgmr.msra.gmra.mrb[2].mxu0 %vm231_vm1, %v418_v23 }
 0x180   : > { %1900 = vmatpush3.msra.mxu0 %v2075_v0  ;;  %1901 = vmatprep.mubr.msk.f32.mxu0 %vm2030_vm0, %v2029_v1 }
 0x181   : > { %1909 = vmatprep.subr.mxu0 %v775_v42 }
 0x199   : > { %v596_v41 = vpop.permute.xlu0 %595 }
 0x19a   : > { %1902 = vmatmul.mubr.msk.f32.vlgmr.msra.gmra.mrb[4].mxu0 %vm231_vm1, %v596_v41 }
 0x19b   : > { %1910 = vmatpush3.msra.mxu0 %v775_v42 }
 0x19c   : > { %1921 = vmatprep.subr.mxu0 %v2029_v1 }
 0x19d   : > { %v672_v43 = vpop.permute.xlu0 %671 }
 0x19e   : > { %v674_v44 = vsel %vm231_vm1, %v672_v43, 0.0 }
 0x19f   : > { %675 = vadd.xlane.f32.xlu0 %v674_v44 }
 0x1b5   : > { %1131 = vrot.lane.b32.xlu0 %v2097_v3, %s2033_s30 }
 0x22c   : > { %v676_v58 = vpop.xlane.xlu0 %675 }
 0x22d   : > { %v677_v9 = vmul.f32 0.125, %v676_v58 }
 0x230   : > { %v1132_v59 = vpop.permute.xlu0 %1131 }
 0x231   : > { %v1134_v60 = vsel %vm231_vm1, %v1132_v59, 0.0 }
 0x232   : > { %1135 = vadd.xlane.f32.xlu0 %v1134_v60 }
 0x248   : > { %1044 = vrot.lane.b32.xlu0 %v2121_v18, %s2033_s30 }
 0x24c   : > { %1427 = vrot.lane.b32.xlu0 %v2091_v2, %s2034_s5 }
 0x250   : > { %1502 = vrot.lane.b32.xlu0 %v2097_v3, %s2034_s5 }
 0x252   : > { %v1891_v35 = vpop.f32.mrb[2].mxu0 }
 0x253   : > { %v505_v36 = vpop.f32.mrb[3].mxu0 }
 0x254   : > { %v1966_v37 = vpack.c.bf16 %v1891_v35, %v505_v36 }
 0x256   : > { %1967 = vmatpush3.bf16.msra.mxu1 %v1966_v37 }
 0x257   : > { %1904 = vmatprep.subr.mxu1 %v2029_v1 }
 0x259   : > { %1897 = vmatmul.mubr.msk.f32.vlgmr.msra.gmra.mrb[2].mxu1 %vm514_vm2, %v315_v38 }
 0x25a   : > { %1905 = vmatpush3.msra.mxu1 %v2075_v0  ;;  %1906 = vmatprep.mubr.msk.f32.mxu1 %vm2030_vm0, %v2029_v1 }
 0x25b   : > { %1968 = vmatprep.subr.bf16.mxu1 %v2032_v24 }
 0x25d   : > { %1907 = vmatmul.mubr.msk.f32.vlgmr.msra.gmra.mrb[4].mxu1 %vm231_vm1, %v684_v26 }
 0x25e   : > { %1918 = vmatprep.mubr.msk.f32.mxu1 %vm2030_vm0, %v2029_v1 }
 0x26d   : > { %v665_v56 = vpop.f32.mrb[4].mxu0 }
 0x26e   : > { %v1903_v57 = vpop.f32.mrb[5].mxu0  ;;  %v669_v10 = vmul.f32 0.5, %v665_v56 }
 0x2bf   : > { %v1136_v63 = vpop.xlane.xlu0 %1135 }
 0x2c0   : > { %v1137_v29 = vmul.f32 0.125, %v1136_v63 }
 0x2c3   : > { %v1045_v4 = vpop.permute.xlu0 %1044 }
 0x2c4   : > { %v1047_v39 = vsel %vm231_vm1, %v1045_v4, 0.0 }
 0x2c7   : > { %v2168_v6 = vpop.permute.xlu0 %1427 }
 0x2cb   : > { %v1503_v7 = vpop.permute.xlu0 %1502 }
 0x2cc   : > { %v1505_v8 = vsel %vm231_vm1, %v1503_v7, 0.0 }
 0x2cd   : > { %1506 = vadd.xlane.f32.xlu0 %v1505_v8 }
 0x2e3   : > { %1340 = vrot.lane.b32.xlu0 %v2107_v5, %s2034_s5 }
 0x2e7   : > { %1415 = vrot.lane.b32.xlu0 %v2121_v18, %s2034_s5 }
 0x32c   : > { %v2151_v45 = vpop.f32.mrb[2].mxu1 }
 0x32d   : > { %v1898_v46 = vpop.f32.mrb[3].mxu1 }
 0x330   : > { %v753_v48 = vpop.f32.mrb[4].mxu1 }
 0x331   : > { %v757_v49 = vmul.f32 0.5, %v753_v48  ;;  %v1908_v50 = vpop.f32.mrb[5].mxu1 }
 0x333   : > { %v766_v51 = vsub.f32 %v757_v49, %v765_v47 }
 0x335   : > { %v767_v52 = vmul.f32 1.442695, %v766_v51 }
 0x337   : > { %2001 = vpow2.f32 %v767_v52 }
 0x341   : > { %v2002_v53 = vpop.eup %2001 }
 0x342   : > { %v769_v54 = vadd.f32 1e-06, %v2002_v53 }
 0x344   : > { %v770_v55 = vmul.f32 0.35355338, %v769_v54 }
 0x346   : > { %776 = vxpose.xlu1.b32.start.end [1/1] (short) (narrow) %v770_v55, 16 }
 0x35a   : > { %v2184_v18 = vpop.xlane.xlu0 %1506 }
 0x35e   : > { %v1341_v19 = vpop.permute.xlu0 %1340 }
 0x362   : > { %v1416_v20 = vpop.permute.xlu0 %1415 }
 0x363   : > { %v1418_v21 = vsel %vm231_vm1, %v1416_v20, 0.0 }
 0x364   : > { %1419 = vadd.xlane.f32.xlu0 %v1418_v21 }
 0x368   : > { %1056 = vrot.lane.b32.xlu1 %v2091_v2, %s2033_s30  ;;  %v678_v2 = vsub.f32 %v669_v10, %v677_v9 }
 0x36a   : > { %v679_v11 = vmul.f32 1.442695, %v678_v2 }
 0x36c   : > { %969 = vrot.lane.b32.xlu1 %v2107_v5, %s2033_s30  ;;  %2003 = vpow2.f32 %v679_v11 }
 0x370   : > { %1143 = vrot.lane.b32.xlu1 %v2115_v16, %s2033_s30 }
 0x376   : > { %v2004_v3 = vpop.eup %2003 }
 0x377   : > { %v681_v12 = vadd.f32 1e-06, %v2004_v3 }
 0x379   : > { %v682_v17 = vmul.f32 0.35355338, %v681_v12 }
 0x3c6   : > { %v792_v61 = vpop.trf.xlu1 }
 0x3c7   : > { %1911 = vmatprep.mubr.msk.f32.mxu0 %vm231_vm1, %v792_v61 }
 0x3ca   : > { %v793_v62 = vpop.trf.xlu1 }
 0x3cb   : > { %1912 = vmatmul.mubr.msk.f32.vlgmr.msra.gmra.mrb[6].mxu0 %vm231_vm1, %v793_v62 }
 0x3cc   : > { %1922 = vmatpush3.msra.mxu0 %v2075_v0  ;;  %1923 = vmatprep.mubr.msk.f32.mxu0 %vm2030_vm0, %v2029_v1 }
 0x3da   : > { %v1057_v5 = vpop.permute.xlu1 %1056 }
 0x3de   : > { %v970_v23 = vpop.permute.xlu1 %969 }
 0x3df   : > { %1924 = vmatmul.mubr.msk.f32.vlgmr.msra.gmra.mrb[8].mxu0 %vm231_vm1, %v970_v23 }
 0x3e2   : > { %v1144_v25 = vpop.permute.xlu1 %1143 }
 0x3e3   : > { %v1146_v26 = vsel %vm231_vm1, %v1144_v25, 1.0 }
 0x3e4   : > { %1931 = vmatprep.subr.mxu0 %v1146_v26 }
 0x3e5   : > { %1932 = vmatpush3.msra.mxu0 %v1146_v26 }
 0x3e6   : > { %1943 = vmatprep.subr.mxu0 %v2029_v1 }
 0x3f1   : > { %v1420_v42 = vpop.xlane.xlu0 %1419 }
 0x3f2   : > { %v1421_v12 = vmul.f32 0.125, %v1420_v42 }
 0x49e   : > { %v1913_v13 = vpop.f32.mrb[6].mxu0 }
 0x49f   : > { %v880_v14 = vpop.f32.mrb[7].mxu0 }
 0x4a0   : > { %v1969_v15 = vpack.c.bf16 %v1913_v13, %v880_v14 }
 0x4a2   : > { %1970 = vmatpush3.bf16.msra.mxu1 %v1969_v15 }
 0x4a3   : > { %1926 = vmatprep.subr.mxu1 %v2029_v1 }
 0x4a5   : > { %1919 = vmatmul.mubr.msk.f32.vlgmr.msra.gmra.mrb[6].mxu1 %vm514_vm2, %v682_v17 }
 0x4a6   : > { %1927 = vmatpush3.msra.mxu1 %v2075_v0  ;;  %1928 = vmatprep.mubr.msk.f32.mxu1 %vm2030_vm0, %v2029_v1 }
 0x4a7   : > { %1971 = vmatprep.subr.bf16.mxu1 %v2032_v24 }
 0x4a9   : > { %1929 = vmatmul.mubr.msk.f32.vlgmr.msra.gmra.mrb[8].mxu1 %vm231_vm1, %v1057_v5 }
 0x4aa   : > { %1940 = vmatprep.mubr.msk.f32.mxu1 %vm2030_vm0, %v2029_v1 }
 0x4b2   : > { %v1039_v40 = vpop.f32.mrb[8].mxu0 }
 0x4b3   : > { %v1925_v41 = vpop.f32.mrb[9].mxu0  ;;  %v1043_v48 = vmul.f32 0.5, %v1039_v40 }
 0x578   : > { %v958_v27 = vpop.f32.mrb[6].mxu1 }
 0x579   : > { %2005 = vrcp.f32 %v958_v27  ;;  %v1920_v28 = vpop.f32.mrb[7].mxu1 }
 0x57c   : > { %v1126_v30 = vpop.f32.mrb[8].mxu1 }
 0x57d   : > { %v1130_v31 = vmul.f32 0.5, %v1126_v30  ;;  %v1930_v32 = vpop.f32.mrb[9].mxu1 }
 0x57f   : > { %v1138_v33 = vsub.f32 %v1130_v31, %v1137_v29 }
 0x581   : > { %v1139_v34 = vmul.f32 1.442695, %v1138_v33 }
 0x583   : > { %v2006_v35 = vpop.eup %2005  ;;  %2007 = vpow2.f32 %v1139_v34 }
 0x584   : > { %965 = vperm.xlu0 %1995, %v2006_v35  }
 0x58d   : > { %v2008_v36 = vpop.eup %2007 }
 0x58e   : > { %v1141_v37 = vadd.f32 1e-06, %v2008_v36 }
 0x590   : > { %v1142_v38 = vmul.f32 0.35355338, %v1141_v37 }
 0x592   : > { %1147 = vxpose.xlu1.b32.start.end [1/1] (short) (narrow) %v1142_v38, 16 }
 0x5bd   : > { %1048 = vadd.xlane.f32.xlu1 %v1047_v39 }
 0x5ce   : > { %1514 = vrot.lane.b32.xlu1 %v2115_v16, %s2034_s5 }
 0x603   : > { %v966_v43 = vpop.permute.xlu0 %965 }
 0x604   : > { %v968_v44 = vmul.f32 %v966_v43, %v958_v27 }
 0x606   : > { %1712 = vrot.lane.b32.xlu0 %v968_v44, %s2036_s6 }
 0x612   : > { %v1163_v46 = vpop.trf.xlu1 }
 0x613   : > { %1933 = vmatprep.mubr.msk.f32.mxu0 %vm231_vm1, %v1163_v46 }
 0x616   : > { %v1164_v47 = vpop.trf.xlu1 }
 0x617   : > { %1934 = vmatmul.mubr.msk.f32.vlgmr.msra.gmra.mrb[10].mxu0 %vm231_vm1, %v1164_v47 }
 0x618   : > { %1944 = vmatpush3.msra.mxu0 %v2075_v0  ;;  %1945 = vmatprep.mubr.msk.f32.mxu0 %vm2030_vm0, %v2029_v1 }
 0x61b   : > { %1946 = vmatmul.mubr.msk.f32.vlgmr.msra.gmra.mrb[12].mxu0 %vm231_vm1, %v1341_v19 }
 0x64a   : > { %v1049_v16 = vpop.xlane.xlu1 %1048 }
 0x64b   : > { %v1050_v49 = vmul.f32 0.125, %v1049_v16 }
 0x64d   : > { %v1051_v50 = vsub.f32 %v1043_v48, %v1050_v49 }
 0x64e   : > { %v1515_v58 = vpop.permute.xlu1 %1514 }
 0x64f   : > { %v1052_v51 = vmul.f32 1.442695, %v1051_v50  ;;  %v1517_v59 = vsel %vm231_vm1, %v1515_v58, 1.0 }
 0x650   : > { %1953 = vmatprep.subr.mxu0 %v1517_v59 }
 0x651   : > { %2009 = vpow2.f32 %v1052_v51  ;;  %1954 = vmatpush3.msra.mxu0 %v1517_v59 }
 0x65b   : > { %v2010_v52 = vpop.eup %2009 }
 0x65c   : > { %v1054_v54 = vadd.f32 1e-06, %v2010_v52 }
 0x65e   : > { %v1055_v57 = vmul.f32 0.35355338, %v1054_v54 }
 0x678   : > { %v1713_v33 = vpop.permute.xlu0 %1712 }
 0x6ea   : > { %v1935_v53 = vpop.f32.mrb[10].mxu0 }
 0x6eb   : > { %v1251_v55 = vpop.f32.mrb[11].mxu0 }
 0x6ec   : > { %v1972_v56 = vpack.c.bf16 %v1935_v53, %v1251_v55 }
 0x6ee   : > { %1973 = vmatpush3.bf16.msra.mxu1 %v1972_v56  ;;  %v1410_v10 = vpop.f32.mrb[12].mxu0 }
 0x6ef   : > { %1948 = vmatprep.subr.mxu1 %v2029_v1  ;;  %v1947_v2 = vpop.f32.mrb[13].mxu0  ;;  %v1414_v13 = vmul.f32 0.5, %v1410_v10 }
 0x6f1   : > { %1941 = vmatmul.mubr.msk.f32.vlgmr.msra.gmra.mrb[10].mxu1 %vm514_vm2, %v1055_v57  ;;  %v1422_v14 = vsub.f32 %v1414_v13, %v1421_v12 }
 0x6f2   : > { %1949 = vmatpush3.msra.mxu1 %v2075_v0  ;;  %1950 = vmatprep.mubr.msk.f32.mxu1 %vm2030_vm0, %v2029_v1  ;;  %v1508_v0 = vmul.f32 0.125, %v2184_v18 }
 0x6f3   : > { %1974 = vmatprep.subr.bf16.mxu1 %v2032_v24  ;;  %v1423_v15 = vmul.f32 1.442695, %v1422_v14 }
 0x6f5   : > { %1951 = vmatmul.mubr.msk.f32.vlgmr.msra.gmra.mrb[12].mxu1 %vm231_vm1, %v2168_v6 }
 0x6f6   : > { %1962 = vmatprep.mubr.msk.f32.mxu1 %vm2030_vm0, %v2029_v1 }
 0x7c4   : > { %v1329_v60 = vpop.f32.mrb[10].mxu1 }
 0x7c5   : > { %v1942_v61 = vpop.f32.mrb[11].mxu1 }
 0x7c8   : > { %v1497_v62 = vpop.f32.mrb[12].mxu1 }
 0x7c9   : > { %v1501_v63 = vmul.f32 0.5, %v1497_v62  ;;  %v1952_v4 = vpop.f32.mrb[13].mxu1 }
 0x7cb   : > { %v1509_v7 = vsub.f32 %v1501_v63, %v1508_v0 }
 0x7cd   : > { %v1510_v24 = vmul.f32 1.442695, %v1509_v7 }
 0x7cf   : > { %2011 = vpow2.f32 %v1510_v24 }
 0x7d0   : > { %2013 = vrcp.f32 %v1329_v60 }
 0x7d1   : > { %2015 = vpow2.f32 %v1423_v15 }
 0x7d9   : > { %v2012_v8 = vpop.eup %2011 }
 0x7da   : > { %v1512_v6 = vadd.f32 1e-06, %v2012_v8  ;;  %v2014_v1 = vpop.eup %2013 }
 0x7db   : > { %v2016_v17 = vpop.eup %2015 }
 0x7dc   : > { %v1513_v9 = vmul.f32 0.35355338, %v1512_v6  ;;  %v1425_v5 = vadd.f32 1e-06, %v2016_v17 }
 0x7de   : > { %1518 = vxpose.xlu1.b32.start.end [1/1] (short) (narrow) %v1513_v9, 16  ;;  %v1426_v21 = vmul.f32 0.35355338, %v1425_v5 }
 0x7fc   : > { %1996 = vset.pattern.permute.xlu1 %v2035_v22 }
 0x800   : > { %1336 = vperm.xlu1 %1996, %v2014_v1  }
 0x85e   : > { %v1534_v11 = vpop.trf.xlu1 }
 0x85f   : > { %1955 = vmatprep.mubr.msk.f32.mxu0 %vm231_vm1, %v1534_v11 }
 0x862   : > { %v1535_v3 = vpop.trf.xlu1 }
 0x863   : > { %1956 = vmatmul.mubr.msk.f32.vlgmr.msra.gmra.mrb[14].mxu0 %vm231_vm1, %v1535_v3 }
 0x87f   : > { %v1337_v27 = vpop.permute.xlu1 %1336 }
 0x880   : > { %v1339_v28 = vmul.f32 %v1337_v27, %v1329_v60 }
 0x936   : > { %v1957_v18 = vpop.f32.mrb[14].mxu0 }
 0x937   : > { %v1622_v19 = vpop.f32.mrb[15].mxu0 }
 0x938   : > { %v1975_v20 = vpack.c.bf16 %v1957_v18, %v1622_v19 }
 0x93a   : > { %1976 = vmatpush3.bf16.msra.mxu1 %v1975_v20 }
 0x93d   : > { %1963 = vmatmul.mubr.msk.f32.vlgmr.msra.gmra.mrb[14].mxu1 %vm514_vm2, %v1426_v21 }
 0xa10   : > { %v1700_v22 = vpop.f32.mrb[14].mxu1 }
 0xa11   : > { %2017 = vrcp.f32 %v1700_v22  ;;  %v1964_v23 = vpop.f32.mrb[15].mxu1 }
 0xa12   : > { %2019 = vrcp.f32 %v2151_v45 }
 0xa1b   : > { %v2018_v25 = vpop.eup %2017 }
 0xa1c   : > { %1707 = vperm.xlu1 %1996, %v2018_v25   ;;  %v2020_v26 = vpop.eup %2019 }
 0xa20   : > { %591 = vperm.xlu1 %1996, %v2020_v26  }
 0xa24   : > { %1716 = vrot.lane.b32.xlu1 %v1339_v28, %s2037_s7 }
 0xa9b   : > { %v1708_v29 = vpop.permute.xlu1 %1707 }
 0xa9c   : > { %v1710_v30 = vmul.f32 %v1708_v29, %v1700_v22 }
 0xa9e   : > { %1720 = vrot.lane.b32.xlu0 %v1710_v30, %s2038_s8 }
 0xa9f   : > { %v592_v31 = vpop.permute.xlu1 %591 }
 0xaa0   : > { %v594_v32 = vmul.f32 %v592_v31, %v2151_v45 }
 0xaa2   : > { %v1723_v34 = vsel %vm231_vm1, %v594_v32, %v1713_v33 }
 0xaa3   : > { %v1717_v35 = vpop.permute.xlu1 %1716 }
 0xaa4   : > { %v1724_v36 = vsel %vm514_vm2, %v1723_v34, %v1717_v35 }
 0xb10   : > { %v1721_v37 = vpop.permute.xlu0 %1720 }
 0xb11   : > { %v1726_v38 = vsel %vm1725_vm3, %v1724_v36, %v1721_v37 }
 0xb12   : > { %1728 = vst.msk [vmem:[%s226_s11] sm:$0xff] %vm1727_vm4, %v1726_v38 }
 0xb13 PF: > { %s14_s15 = sadd.s32 1, %s2027_s15  }
 0xb14   : > { %p11_p4 = scmp.ge.s32.totalorder %s14_s15, 4  }
 0xb16   :  { %13 = sbr.rel (!%p11_p4) target bundleno = 1 (0x1), region = 72 }

</bundles_post_ra>
